<compile_context>
chip_gen: v6e
topology: v6e:2x2x1
jax: 0.10.0
libtpu: 0.0.40
codegen_flags: <defaults>
</compile_context>

<pallas_src>
import functools

import jax
import jax.numpy as jnp
from jax.experimental import pallas as pl
from jax.experimental.pallas import tpu as pltpu


def _round_up(x, m):
    return (x + m - 1) // m * m


def _vmem_capacity_bytes():
    """Physical per-core VMEM; conservative (v7x, 64 MiB) fallback if unsupported."""
    try:
        cap = int(pltpu.get_tpu_info().vmem_capacity_bytes)
        if cap > 0:
            return cap
    except Exception:
        pass
    return 64 * 1024 * 1024


def _spec(shape, index_map, *, single_buffer=False):
    """BlockSpec; grid-invariant operands get a single VMEM buffer when supported."""
    if single_buffer and hasattr(pl, "Buffered"):
        try:
            return pl.BlockSpec(shape, index_map, pipeline_mode=pl.Buffered(1))
        except TypeError:  # older jax without the pipeline_mode kwarg
            pass
    return pl.BlockSpec(shape, index_map)


def _ffn_kernel(x_ref, w1_ref, b1_ref, w2_ref, b2_ref, g_ref, beta_ref,
                o_ref, acc_ref, *, eps):
    """One (tile_m, d_model) row tile x one dff (K) block.

    grid = (row_tiles, k_blocks); K is a reduction into acc_ref, and the residual +
    LayerNorm epilogue fires on the last K block.  Dropout p=0.0 is identity.
    """
    k = pl.program_id(1)
    nk = pl.num_programs(1)

    @pl.when(k == 0)
    def _():
        acc_ref[...] = jnp.zeros_like(acc_ref)

    # linear1 (bf16 operands, f32 accumulation) + bias + ReLU for this dff block.
    x_bf = x_ref[...].astype(jnp.bfloat16)
    h = jnp.dot(x_bf, w1_ref[...], preferred_element_type=jnp.float32)
    h = jnp.maximum(h + b1_ref[...], 0.0)

    # linear2 partial product, accumulated over dff blocks.
    acc_ref[...] += jnp.dot(h.astype(jnp.bfloat16), w2_ref[...],
                            preferred_element_type=jnp.float32)

    @pl.when(k == nk - 1)
    def _():
        x = x_ref[...].astype(jnp.float32)
        t = x + acc_ref[...] + b2_ref[...]                 # residual
        # Mean-subtracted (two-pass) LayerNorm, all f32.
        mean = jnp.mean(t, axis=-1, keepdims=True)
        c = t - mean
        var = jnp.mean(c * c, axis=-1, keepdims=True)
        norm = c * jax.lax.rsqrt(var + eps)
        o_ref[...] = (norm * g_ref[...] + beta_ref[...]).astype(o_ref.dtype)


def _select_tiling(n_rows, d_model, dff, x_itemsize, out_itemsize, vmem_cap):
    budget = int(vmem_cap * 0.45)          # headroom for Mosaic scratch / spill

    # Row tile: bigger streaming tiles on 128 MiB parts (v5e/v6e), 256 on v7x.
    tile_m = 512 if vmem_cap >= 96 * 1024 * 1024 else 256
    if n_rows <= 256:
        tile_m = _round_up(n_rows, 8)
    elif n_rows <= tile_m * 2:
        # Split into >=2 row tiles so the "parallel" axis can span both v7x TCs.
        tile_m = _round_up(pl.cdiv(n_rows, 2), 128)
    else:
        tile_m = max(128, (tile_m // 128) * 128)

    def footprint(tm, tk, nk):
        wbuf = 1 if nk == 1 else 2                      # weight buffer count
        return (2 * tm * d_model * x_itemsize           # x tiles (double-buffered)
                + 2 * tm * d_model * out_itemsize       # out tiles (double-buffered)
                + wbuf * 2 * d_model * tk * 2           # W1 + W2 (bf16)
                + wbuf * tk * 4 + 3 * d_model * 4       # b1 / b2,gamma,beta (f32)
                + tm * d_model * 4                      # f32 accumulator scratch
                + tm * tk * 4)                          # f32 hidden activation

    # dff (K) block: full dff if it fits, else the largest clean divisor >= 512.
    tile_k, n_k = dff, 1
    if footprint(tile_m, dff, 1) > budget:
        for cand in (4096, 2048, 1024, 512):
            if cand < dff and dff % cand == 0 and footprint(tile_m, cand, 2) <= budget:
                tile_k, n_k = cand, dff // cand
                break
        else:
            # TODO(synk): no clean dff divisor; fall back to shrinking the row tile.
            while tile_m > 128 and footprint(tile_m, dff, 1) > budget:
                tile_m = max(128, tile_m // 2)

    est = footprint(tile_m, tile_k, n_k)
    hard_cap = min(int(vmem_cap * 0.75), vmem_cap - 16 * 1024 * 1024)
    vmem_limit = int(min(max(est * 3 // 2, 32 * 1024 * 1024), hard_cap))
    return tile_m, tile_k, n_k, vmem_limit


def ffn_layer(tgt, w1, b1, w2, b2, gamma, beta, *, eps=1e-5):
    """FFNLayer forward: LayerNorm(tgt + Linear2(ReLU(Linear1(tgt)))).

    tgt: (..., d_model); w1: (d_model, dff); w2: (dff, d_model).  Pass w1/w2 already
    in bf16 (see prepare_ffn_params) to avoid a per-call HBM cast.
    """
    orig_shape = tgt.shape
    d_model = orig_shape[-1]
    dff = w1.shape[1]
    x = tgt.reshape(-1, d_model)
    n_rows = x.shape[0]

    # Cast weights only if the caller did not pre-cast.
    w1_bf = w1 if w1.dtype == jnp.bfloat16 else w1.astype(jnp.bfloat16)
    w2_bf = w2 if w2.dtype == jnp.bfloat16 else w2.astype(jnp.bfloat16)

    # 2D views of 1D params so the last dim is lane-mapped; epilogue params in f32.
    b1_2d = b1.reshape(1, dff).astype(jnp.float32)
    b2_2d = b2.reshape(1, d_model).astype(jnp.float32)
    g_2d = gamma.reshape(1, d_model).astype(jnp.float32)
    beta_2d = beta.reshape(1, d_model).astype(jnp.float32)

    vmem_cap = _vmem_capacity_bytes()
    tile_m, tile_k, n_k, vmem_limit = _select_tiling(
        n_rows, d_model, dff, x.dtype.itemsize, tgt.dtype.itemsize, vmem_cap)

    # Padding only when a single row tile exceeds n_rows (tiny inputs); large inputs
    # stream unpadded and the ragged last tile is masked by Pallas boundary handling.
    padded_rows = n_rows
    if tile_m > n_rows:
        padded_rows = tile_m
        x = jnp.pad(x, ((0, padded_rows - n_rows), (0, 0)))
    n_tiles = pl.cdiv(padded_rows, tile_m)

    cost = pl.CostEstimate(
        flops=4 * n_rows * d_model * dff,
        transcendentals=n_rows,
        bytes_accessed=(n_rows * d_model * (x.dtype.itemsize + tgt.dtype.itemsize)
                        + 2 * d_model * dff * 2
                        + (2 * dff + 3 * d_model) * 4),
    )

    weights_invariant = (n_k == 1)
    grid_spec = pltpu.PrefetchScalarGridSpec(
        num_scalar_prefetch=0,
        grid=(n_tiles, n_k),
        in_specs=[
            _spec((tile_m, d_model), lambda i, k: (i, 0)),                               # x rows
            _spec((d_model, tile_k), lambda i, k: (0, k), single_buffer=weights_invariant),  # W1
            _spec((1, tile_k), lambda i, k: (0, k), single_buffer=weights_invariant),        # b1
            _spec((tile_k, d_model), lambda i, k: (k, 0), single_buffer=weights_invariant),  # W2
            _spec((1, d_model), lambda i, k: (0, 0), single_buffer=True),                    # b2
            _spec((1, d_model), lambda i, k: (0, 0), single_buffer=True),                    # gamma
            _spec((1, d_model), lambda i, k: (0, 0), single_buffer=True),                    # beta
        ],
        out_specs=pl.BlockSpec((tile_m, d_model), lambda i, k: (i, 0)),
        scratch_shapes=[pltpu.VMEM((tile_m, d_model), jnp.float32)],
    )

    out = pl.pallas_call(
        functools.partial(_ffn_kernel, eps=eps),
        out_shape=jax.ShapeDtypeStruct((padded_rows, d_model), tgt.dtype),
        grid_spec=grid_spec,
        compiler_params=pltpu.CompilerParams(
            dimension_semantics=("parallel", "arbitrary"),
            vmem_limit_bytes=vmem_limit,
        ),
        cost_estimate=cost,
    )(x, w1_bf, b1_2d, w2_bf, b2_2d, g_2d, beta_2d)

    if padded_rows != n_rows:
        out = out[:n_rows]
    return out.reshape(orig_shape)


def prepare_ffn_params(w1, b1, w2, b2, gamma, beta):
    """One-time bf16 cast of the matmul weights (keeps it out of the per-call path)."""
    return (w1.astype(jnp.bfloat16), b1, w2.astype(jnp.bfloat16), b2, gamma, beta)


def _xavier_uniform(key, fan_in, fan_out, shape):
    bound = (6.0 / (fan_in + fan_out)) ** 0.5
    return jax.random.uniform(key, shape, jnp.float32, -bound, bound)


def init_ffn_params(key, d_model, dim_feedforward):
    k1, k2, k3, k4 = jax.random.split(key, 4)
    # PyTorch Linear weight is (out, in); xavier_uniform_ uses (fan_out, fan_in).
    # We store the transposed weight so the kernel does x @ W.
    w1 = _xavier_uniform(k1, d_model, dim_feedforward, (d_model, dim_feedforward))
    w2 = _xavier_uniform(k2, dim_feedforward, d_model, (dim_feedforward, d_model))
    # Biases (dim==1) are untouched by _reset_parameters; PyTorch default is
    # uniform(-1/sqrt(fan_in), 1/sqrt(fan_in)). Deterministic synthetic init here.
    b1 = jax.random.uniform(k3, (dim_feedforward,), jnp.float32,
                            -1.0 / d_model ** 0.5, 1.0 / d_model ** 0.5)
    b2 = jax.random.uniform(k4, (d_model,), jnp.float32,
                            -1.0 / dim_feedforward ** 0.5, 1.0 / dim_feedforward ** 0.5)
    gamma = jnp.ones((d_model,), jnp.float32)
    beta = jnp.zeros((d_model,), jnp.float32)
    return w1, b1, w2, b2, gamma, beta


def ffn_reference(tgt, w1, b1, w2, b2, gamma, beta, eps=1e-5):
    h = jnp.maximum(tgt @ w1 + b1, 0.0)
    tgt2 = h @ w2 + b2
    t = tgt + tgt2
    mean = jnp.mean(t, axis=-1, keepdims=True)
    var = jnp.mean((t - mean) ** 2, axis=-1, keepdims=True)
    return (t - mean) / jnp.sqrt(var + eps) * gamma + beta


if __name__ == "__main__":
    seq_len, batch, d_model, dim_feedforward = 8, 2, 128, 256

    key = jax.random.PRNGKey(0)
    k_x, k_x2, k_p = jax.random.split(key, 3)
    params_f32 = init_ffn_params(k_p, d_model, dim_feedforward)
    params_kernel = prepare_ffn_params(*params_f32)   # bf16 weight cast, done once

    # Case 1: standard shape.
    tgt = jax.random.normal(k_x, (seq_len, batch, d_model), jnp.float32)
    out = jax.block_until_ready(ffn_layer(tgt, *params_kernel))
    ref = ffn_reference(tgt, *params_f32)
    assert out.shape == tgt.shape
    # bf16 matmul operands with f32 accumulation -> slightly looser tolerance vs f32 ref.
    assert jnp.allclose(out, ref, atol=2e-2, rtol=2e-2), (
        f"mismatch vs reference: max abs diff {jnp.max(jnp.abs(out - ref))}")

    # Case 2: row count not divisible by 8 -> exercises the tiny-input padding path.
    tgt2 = jax.random.normal(k_x2, (7, 3, d_model), jnp.float32)
    out2 = jax.block_until_ready(ffn_layer(tgt2, *params_kernel))
    ref2 = ffn_reference(tgt2, *params_f32)
    assert out2.shape == tgt2.shape
    assert jnp.allclose(out2, ref2, atol=2e-2, rtol=2e-2), (
        f"mismatch vs reference (padded case): max abs diff {jnp.max(jnp.abs(out2 - ref2))}")

    print("KERNEL_OK")
</pallas_src>

<mosaic_0001>
module attributes {stable_mosaic.version = 11 : i64} {
  func.func @_ffn_kernel(%arg0: i32, %arg1: i32, %arg2: memref<16x128xf32, #tpu.memory_space<vmem>>, %arg3: memref<128x256xbf16, #tpu.memory_space<vmem>>, %arg4: memref<1x256xf32, #tpu.memory_space<vmem>>, %arg5: memref<256x128xbf16, #tpu.memory_space<vmem>>, %arg6: memref<1x128xf32, #tpu.memory_space<vmem>>, %arg7: memref<1x128xf32, #tpu.memory_space<vmem>>, %arg8: memref<1x128xf32, #tpu.memory_space<vmem>>, %arg9: memref<16x128xf32, #tpu.memory_space<vmem>>, %arg10: memref<16x128xf32, #tpu.memory_space<vmem>>) attributes {dimension_semantics = [#tpu.dimension_semantics<parallel>, #tpu.dimension_semantics<arbitrary>], iteration_bounds = array<i64: 1, 1>, scalar_prefetch = 0 : i64, scratch_operands = 1 : i64, tpu.core_type = #tpu.core_type<tc>, window_params = [{transform_indices = @transform_0, window_bounds = array<i64: 16, 128>}, {pipeline_mode = #tpu.pipeline_mode<synchronous>, transform_indices = @transform_1, window_bounds = array<i64: 128, 256>}, {pipeline_mode = #tpu.pipeline_mode<synchronous>, transform_indices = @transform_2, window_bounds = array<i64: 1, 256>}, {pipeline_mode = #tpu.pipeline_mode<synchronous>, transform_indices = @transform_3, window_bounds = array<i64: 256, 128>}, {pipeline_mode = #tpu.pipeline_mode<synchronous>, transform_indices = @transform_4, window_bounds = array<i64: 1, 128>}, {pipeline_mode = #tpu.pipeline_mode<synchronous>, transform_indices = @transform_5, window_bounds = array<i64: 1, 128>}, {pipeline_mode = #tpu.pipeline_mode<synchronous>, transform_indices = @transform_6, window_bounds = array<i64: 1, 128>}, {transform_indices = @transform_7, window_bounds = array<i64: 16, 128>}]} {
    %c0_i32 = arith.constant 0 : i32
    %0 = arith.cmpi eq, %arg1, %c0_i32 : i32
    %1 = arith.extui %0 : i1 to i32
    %c0_i32_0 = arith.constant 0 : i32
    %2 = arith.cmpi ne, %1, %c0_i32_0 : i32
    scf.if %2 {
      %cst_16 = arith.constant 0.000000e+00 : f32
      %21 = vector.broadcast %cst_16 : f32 to vector<16x128xf32>
      %c0_17 = arith.constant 0 : index
      %c0_18 = arith.constant 0 : index
      %22 = vector.load %arg10[%c0_17, %c0_18] : memref<16x128xf32, #tpu.memory_space<vmem>>, vector<16x128xf32>
      tpu.vector_store %arg10[%c0_17, %c0_18], %21 {strides = array<i32>} : memref<16x128xf32, #tpu.memory_space<vmem>>, vector<16x128xf32>,
    } else {
    }
    %c0 = arith.constant 0 : index
    %c0_1 = arith.constant 0 : index
    %3 = vector.load %arg2[%c0, %c0_1] : memref<16x128xf32, #tpu.memory_space<vmem>>, vector<16x128xf32>
    %4 = arith.truncf %3 : vector<16x128xf32> to vector<16x128xbf16>
    %c0_2 = arith.constant 0 : index
    %c0_3 = arith.constant 0 : index
    %5 = vector.load %arg3[%c0_2, %c0_3] : memref<128x256xbf16, #tpu.memory_space<vmem>>, vector<128x256xbf16>
    %cst = arith.constant dense<0.000000e+00> : vector<16x256xf32>
    %6 = tpu.matmul %4, %5, %cst {dimension_numbers = #tpu.dot_dimension_numbers<[1], [0], [0], [1], [0, 0, 1, 1], [], []>} : vector<16x128xbf16>, vector<128x256xbf16>, vector<16x256xf32> -> vector<16x256xf32>
    %c0_4 = arith.constant 0 : index
    %c0_5 = arith.constant 0 : index
    %7 = vector.load %arg4[%c0_4, %c0_5] : memref<1x256xf32, #tpu.memory_space<vmem>>, vector<1x256xf32>
    %8 = vector.broadcast %7 : vector<1x256xf32> to vector<16x256xf32>
    %9 = arith.addf %6, %8 : vector<16x256xf32>
    %cst_6 = arith.constant 0.000000e+00 : f32
    %10 = vector.broadcast %cst_6 : f32 to vector<16x256xf32>
    %11 = arith.maximumf %9, %10 : vector<16x256xf32>
    %c0_7 = arith.constant 0 : index
    %c0_8 = arith.constant 0 : index
    %12 = vector.load %arg10[%c0_7, %c0_8] : memref<16x128xf32, #tpu.memory_space<vmem>>, vector<16x128xf32>
    %13 = arith.truncf %11 : vector<16x256xf32> to vector<16x256xbf16>
    %c0_9 = arith.constant 0 : index
    %c0_10 = arith.constant 0 : index
    %14 = vector.load %arg5[%c0_9, %c0_10] : memref<256x128xbf16, #tpu.memory_space<vmem>>, vector<256x128xbf16>
    %cst_11 = arith.constant dense<0.000000e+00> : vector<16x128xf32>
    %15 = tpu.matmul %13, %14, %cst_11 {dimension_numbers = #tpu.dot_dimension_numbers<[1], [0], [0], [1], [0, 0, 1, 1], [], []>} : vector<16x256xbf16>, vector<256x128xbf16>, vector<16x128xf32> -> vector<16x128xf32>
    %16 = arith.addf %12, %15 : vector<16x128xf32>
    %c0_12 = arith.constant 0 : index
    %c0_13 = arith.constant 0 : index
    %17 = vector.load %arg10[%c0_12, %c0_13] : memref<16x128xf32, #tpu.memory_space<vmem>>, vector<16x128xf32>
    tpu.vector_store %arg10[%c0_12, %c0_13], %16 {strides = array<i32>} : memref<16x128xf32, #tpu.memory_space<vmem>>, vector<16x128xf32>,
    %c0_i32_14 = arith.constant 0 : i32
    %18 = arith.cmpi eq, %arg1, %c0_i32_14 : i32
    %19 = arith.extui %18 : i1 to i32
    %c0_i32_15 = arith.constant 0 : i32
    %20 = arith.cmpi ne, %19, %c0_i32_15 : i32
    scf.if %20 {
      %c0_16 = arith.constant 0 : index
      %c0_17 = arith.constant 0 : index
      %21 = vector.load %arg2[%c0_16, %c0_17] : memref<16x128xf32, #tpu.memory_space<vmem>>, vector<16x128xf32>
      %c0_18 = arith.constant 0 : index
      %c0_19 = arith.constant 0 : index
      %22 = vector.load %arg10[%c0_18, %c0_19] : memref<16x128xf32, #tpu.memory_space<vmem>>, vector<16x128xf32>
      %23 = arith.addf %21, %22 : vector<16x128xf32>
      %c0_20 = arith.constant 0 : index
      %c0_21 = arith.constant 0 : index
      %24 = vector.load %arg6[%c0_20, %c0_21] : memref<1x128xf32, #tpu.memory_space<vmem>>, vector<1x128xf32>
      %25 = vector.broadcast %24 : vector<1x128xf32> to vector<16x128xf32>
      %26 = arith.addf %23, %25 : vector<16x128xf32>
      %cst_22 = arith.constant dense<0.000000e+00> : vector<16xf32>
      %27 = vector.multi_reduction <add>, %26, %cst_22 [1] : vector<16x128xf32> to vector<16xf32>
      %28 = vector.shape_cast %27 : vector<16xf32> to vector<16x1xf32>
      %cst_23 = arith.constant 1.280000e+02 : f32
      %29 = vector.broadcast %cst_23 : f32 to vector<16x1xf32>
      %30 = arith.divf %28, %29 : vector<16x1xf32>
      %31 = vector.broadcast %30 : vector<16x1xf32> to vector<16x128xf32>
      %32 = arith.subf %26, %31 : vector<16x128xf32>
      %33 = arith.mulf %32, %32 : vector<16x128xf32>
      %cst_24 = arith.constant dense<0.000000e+00> : vector<16xf32>
      %34 = vector.multi_reduction <add>, %33, %cst_24 [1] : vector<16x128xf32> to vector<16xf32>
      %35 = vector.shape_cast %34 : vector<16xf32> to vector<16x1xf32>
      %cst_25 = arith.constant 1.280000e+02 : f32
      %36 = vector.broadcast %cst_25 : f32 to vector<16x1xf32>
      %37 = arith.divf %35, %36 : vector<16x1xf32>
      %cst_26 = arith.constant 9.99999974E-6 : f32
      %38 = vector.broadcast %cst_26 : f32 to vector<16x1xf32>
      %39 = arith.addf %37, %38 : vector<16x1xf32>
      %40 = math.rsqrt %39 : vector<16x1xf32>
      %41 = vector.broadcast %40 : vector<16x1xf32> to vector<16x128xf32>
      %42 = arith.mulf %32, %41 : vector<16x128xf32>
      %c0_27 = arith.constant 0 : index
      %c0_28 = arith.constant 0 : index
      %43 = vector.load %arg7[%c0_27, %c0_28] : memref<1x128xf32, #tpu.memory_space<vmem>>, vector<1x128xf32>
      %44 = vector.broadcast %43 : vector<1x128xf32> to vector<16x128xf32>
      %45 = arith.mulf %42, %44 : vector<16x128xf32>
      %c0_29 = arith.constant 0 : index
      %c0_30 = arith.constant 0 : index
      %46 = vector.load %arg8[%c0_29, %c0_30] : memref<1x128xf32, #tpu.memory_space<vmem>>, vector<1x128xf32>
      %47 = vector.broadcast %46 : vector<1x128xf32> to vector<16x128xf32>
      %48 = arith.addf %45, %47 : vector<16x128xf32>
      %c0_31 = arith.constant 0 : index
      %c0_32 = arith.constant 0 : index
      %49 = vector.load %arg9[%c0_31, %c0_32] : memref<16x128xf32, #tpu.memory_space<vmem>>, vector<16x128xf32>
      tpu.vector_store %arg9[%c0_31, %c0_32], %48 {strides = array<i32>} : memref<16x128xf32, #tpu.memory_space<vmem>>, vector<16x128xf32>,
    } else {
    }
    return
  }
  func.func @transform_0(%arg0: i32, %arg1: i32) -> (i32, i32) {
    %c0_i32 = arith.constant 0 : i32
    %c0_i32_0 = arith.constant 0 : i32
    return %arg0, %c0_i32 : i32, i32
  }
  func.func @transform_1(%arg0: i32, %arg1: i32) -> (i32, i32) {
    %c0_i32 = arith.constant 0 : i32
    %c0_i32_0 = arith.constant 0 : i32
    return %c0_i32, %arg1 : i32, i32
  }
  func.func @transform_2(%arg0: i32, %arg1: i32) -> (i32, i32) {
    %c0_i32 = arith.constant 0 : i32
    %c0_i32_0 = arith.constant 0 : i32
    return %c0_i32, %arg1 : i32, i32
  }
  func.func @transform_3(%arg0: i32, %arg1: i32) -> (i32, i32) {
    %c0_i32 = arith.constant 0 : i32
    %c0_i32_0 = arith.constant 0 : i32
    return %arg1, %c0_i32 : i32, i32
  }
  func.func @transform_4(%arg0: i32, %arg1: i32) -> (i32, i32) {
    %c0_i32 = arith.constant 0 : i32
    %c0_i32_0 = arith.constant 0 : i32
    %c0_i32_1 = arith.constant 0 : i32
    return %c0_i32, %c0_i32_0 : i32, i32
  }
  func.func @transform_5(%arg0: i32, %arg1: i32) -> (i32, i32) {
    %c0_i32 = arith.constant 0 : i32
    %c0_i32_0 = arith.constant 0 : i32
    %c0_i32_1 = arith.constant 0 : i32
    return %c0_i32, %c0_i32_0 : i32, i32
  }
  func.func @transform_6(%arg0: i32, %arg1: i32) -> (i32, i32) {
    %c0_i32 = arith.constant 0 : i32
    %c0_i32_0 = arith.constant 0 : i32
    %c0_i32_1 = arith.constant 0 : i32
    return %c0_i32, %c0_i32_0 : i32, i32
  }
  func.func @transform_7(%arg0: i32, %arg1: i32) -> (i32, i32) {
    %c0_i32 = arith.constant 0 : i32
    %c0_i32_0 = arith.constant 0 : i32
    return %arg0, %c0_i32 : i32, i32
  }
}

</mosaic_0001>

<bundles_post_ra>
// kernel: tpu_custom_call.1
= control target key start
LH: loop header
LB: loop body
LE: loop exit
PB: predicated region body
PF: predicated region fallthrough
CT: control target
= control target key end

     0   :  { %12 = vsyncpa [#allocation4], 0  ;;  %s767_s0 = inlined_call_operand.hbm [shape: f32[16,128], index: 0, kind: input, shape index: {}]   ;;  %s768_s1 = inlined_call_operand.hbm [shape: bf16[128,256], index: 1, kind: input, shape index: {}]   ;;  %s769_s2 = inlined_call_operand.vmem [shape: f32[1,256], index: 2, kind: input, shape index: {}]   ;;  %s770_s3 = inlined_call_operand.hbm [shape: bf16[256,128], index: 3, kind: input, shape index: {}]   ;;  %s771_s4 = inlined_call_operand.vmem [shape: f32[1,128], index: 4, kind: input, shape index: {}]   ;;  %s772_s5 = inlined_call_operand.vmem [shape: f32[1,128], index: 5, kind: input, shape index: {}]   ;;  %s773_s6 = inlined_call_operand.vmem [shape: f32[1,128], index: 6, kind: input, shape index: {}]   ;;  %s774_s7 = inlined_call_operand.hbm [shape: f32[16,128], index: 7, kind: output, shape index: {}]  }
   0x1   :  { %13 = vsyncpa [#allocation7], 0 }
   0x2   :  { %14 = vsyncpa [#allocation5], 0  ;;  %s685_s24 = smov [#allocation6]   ;;  %s686_s26 = smov [#allocation3]  }
   0x3   :  { %s32_s25 = sshll.u32 %s685_s24, 4  ;;  %s20_s27 = sshll.u32 %s686_s26, 4  ;;  %s33_s25 = int_to_ptr.vmem [resolvable:$true] %s32_s25  ;;  %s21_s27 = int_to_ptr.vmem [resolvable:$true] %s20_s27 }
   0x4   :  { %s607_s28 = scalar_lea.vmem %s33_s25, 2048  ;;  %p612_p1 = scmp.lt.s32.totalorder %s33_s25, %s33_s25 }
   0x5   :  { %p608_p0 = scmp.ne.s32.totalorder %s33_s25, %s607_s28  ;;  %p613_p2 = scmp.lt.s32.totalorder %s607_s28, %s607_s28 }
   0x7   :  { %p614_p3 = por %p613_p2, %p612_p1 }
   0x9   :  { %p615_p4 = pnand %p614_p3, %p608_p0 }
   0xb   :  { %618 = shalt.err (!%p615_p4)
}
   0xc   :  { %s687_s29 = smov 128   ;;  %s688_s30 = smov 8  }
   0xd   :  { %38 = dma.hbm_to_vmem [thread:$0]  %s768_s1, 2048, %s33_s25, [#allocation7], %s687_s29, %s687_s29, %s688_s30  }
   0xe   :  { %s627_s10 = scalar_lea.vmem %s21_s27, 256  ;;  %p632_p6 = scmp.lt.s32.totalorder %s21_s27, %s21_s27 }
   0xf   :  { %p628_p5 = scmp.ne.s32.totalorder %s21_s27, %s627_s10  ;;  %p633_p7 = scmp.lt.s32.totalorder %s627_s10, %s627_s10 }
  0x11   :  { %p634_p8 = por %p633_p7, %p632_p6 }
  0x13   :  { %p635_p9 = pnand %p634_p8, %p628_p5 }
  0x15   :  { %638 = shalt.err (!%p635_p9)
}
  0x16   :  { %26 = dma.hbm_to_vmem [thread:$0]  %s767_s0, 256, %s21_s27, [#allocation4], %s687_s29, %s687_s29, %s688_s30  }
  0x17   :  { %s689_s13 = smov [#allocation8]  }
  0x18   :  { %s46_s14 = sshll.u32 %s689_s13, 4  ;;  %s47_s14 = int_to_ptr.vmem [resolvable:$true] %s46_s14 }
  0x19   :  { %s647_s15 = scalar_lea.vmem %s47_s14, 2048  ;;  %p652_p11 = scmp.lt.s32.totalorder %s47_s14, %s47_s14 }
  0x1a   :  { %p648_p10 = scmp.ne.s32.totalorder %s47_s14, %s647_s15  ;;  %p653_p12 = scmp.lt.s32.totalorder %s647_s15, %s647_s15 }
  0x1c   :  { %p654_p13 = por %p653_p12, %p652_p11 }
  0x1e   :  { %p655_p0 = pnand %p654_p13, %p648_p10 }
  0x20   :  { %658 = shalt.err (!%p655_p0)
}
  0x21   :  { %s690_s1 = smov 64   ;;  %s691_s16 = smov 4  }
  0x22   :  { %52 = dma.hbm_to_vmem [thread:$0]  %s770_s3, 2048, %s47_s14, [#allocation7], %s690_s1, %s690_s1, %s691_s16  }
  0x23   :  { %679 = dma.done.wait [#allocation4], 256  }
  0x24   :  { %680 = vsyncadd [#allocation4], 4294967040 }
  0x25   :  { %681 = dma.done.wait [#allocation7], 4096  }
  0x26   :  { %682 = vsyncadd [#allocation7], 4294963200  ;;  %v692_v0 = vmov 0   ;;  %v555_v1 = vld [vmem:[#allocation6 + $0x74] ss:$8 sps:$4 sm:$0xff]   ;;  %v583_v16 = vld [vmem:[#allocation8 + $0x68] sm:$0xff]   ;;  %v96_v36 = vlaneseq }
  0x27   :  { %218 = vmatprep.mubr.bf16.mxu0 %v692_v0  ;;  %v557_v2 = vld [vmem:[#allocation6 + $0x70] ss:$8 sps:$4 sm:$0xff]   ;;  %186 = vmatprep.subr.bf16.mxu0 %v555_v1  ;;  %v558_v3 = vld [vmem:[#allocation6 + $0x64] ss:$8 sps:$4 sm:$0xff]   ;;  %v560_v4 = vld [vmem:[#allocation6 + $0x60] ss:$8 sps:$4 sm:$0xff]  }
  0x28   :  { %187 = vmatpush1.bf16.msra.mxu0 %v557_v2  ;;  %v561_v5 = vld [vmem:[#allocation6 + $0x54] ss:$8 sps:$4 sm:$0xff]   ;;  %v563_v6 = vld [vmem:[#allocation6 + $0x50] ss:$8 sps:$4 sm:$0xff]   ;;  %v564_v7 = vld [vmem:[#allocation6 + $0x44] ss:$8 sps:$4 sm:$0xff]  }
  0x29   :  { %188 = vmatprep.subr.bf16.mxu0 %v558_v3  ;;  %v566_v8 = vld [vmem:[#allocation6 + $0x40] ss:$8 sps:$4 sm:$0xff]   ;;  %v567_v9 = vld [vmem:[#allocation6 + $0x34] ss:$8 sps:$4 sm:$0xff]   ;;  %v569_v11 = vld [vmem:[#allocation6 + $0x30] ss:$8 sps:$4 sm:$0xff]  }
  0x2a   :  { %v579_v10 = vld [vmem:[#allocation8 + $0x78] sm:$0xff]   ;;  %v570_v13 = vld [vmem:[#allocation6 + $0x24] ss:$8 sps:$4 sm:$0xff]   ;;  %v581_v14 = vld [vmem:[#allocation8 + $0x70] sm:$0xff]   ;;  %v97_v37 = vshrl.u32 %v96_v36, 7  ;;  %s693_s23 = smov [#allocation9]  }
  0x2b   :  { %v580_v12 = vld [vmem:[#allocation8 + $0x38] sm:$0xff]   ;;  %524 = vmatprep.subr.bf16.mxu1 %v579_v10  ;;  %v582_v15 = vld [vmem:[#allocation8 + $0x30] sm:$0xff]   ;;  %v572_v17 = vld [vmem:[#allocation6 + $0x20] ss:$8 sps:$4 sm:$0xff]   ;;  %s476_s24 = sshll.u32 %s693_s23, 4  ;;  %s477_s24 = int_to_ptr.vmem [resolvable:$true] %s476_s24 }
  0x2c   :  { %189 = vmatpush1.bf16.msra.mxu0 %v560_v4  ;;  %525 = vmatpush3.bf16.msra.mxu1 %v580_v12  ;;  %v573_v18 = vld [vmem:[#allocation6 + $0x14] ss:$8 sps:$4 sm:$0xff]   ;;  %v584_v19 = vld [vmem:[#allocation8 + $0x28] sm:$0xff]   ;;  %v585_v20 = vld [vmem:[#allocation8 + $0x60] sm:$0xff]   ;;  %v102_v38 = vsub.s32 1, %v97_v37  ;;  %v98_v39 = vsub.s32 0, %v97_v37  ;;  %p664_p2 = scmp.lt.s32.totalorder %s477_s24, %s477_s24 }
  0x2d   :  { %190 = vmatprep.subr.bf16.mxu0 %v561_v5  ;;  %526 = vmatprep.subr.bf16.mxu1 %v581_v14  ;;  %v575_v21 = vld [vmem:[#allocation6 + $0x10] ss:$8 sps:$4 sm:$0xff]   ;;  %v586_v22 = vld [vmem:[#allocation8 + $0x20] sm:$0xff]   ;;  %v591_v32 = vld [vmem:[#allocation8 + $0x48] sm:$0xff]   ;;  %s659_s25 = scalar_lea.vmem %s477_s24, 256 }
  0x2e   :  { %v576_v23 = vld [vmem:[#allocation6 + $0x4] ss:$8 sps:$4 sm:$0xff]   ;;  %v587_v24 = vld [vmem:[#allocation8 + $0x58] sm:$0xff]   ;;  %v578_v25 = vld [vmem:[#allocation6] ss:$8 sps:$4 sm:$0xff]   ;;  %p660_p1 = scmp.ne.s32.totalorder %s477_s24, %s659_s25  ;;  %p665_p3 = scmp.lt.s32.totalorder %s659_s25, %s659_s25 }
  0x2f   :  { %v75_v26 = vld [vmem:[#allocation3] sm:$0xff]  ;;  %v76_v27 = vld [vmem:[#allocation3 + $0x8] sm:$0xff]  ;;  %v592_v33 = vld [vmem:[#allocation8 + $0x8] sm:$0xff]  }
  0x30   :  { %191 = vmatpush1.bf16.msra.mxu0 %v563_v6  ;;  %527 = vmatpush3.bf16.msra.mxu1 %v582_v15  ;;  %v588_v28 = vld [vmem:[#allocation8 + $0x18] sm:$0xff]   ;;  %v77_v29 = vpack.c.bf16 %v76_v27, %v75_v26  ;;  %v589_v30 = vld [vmem:[#allocation8 + $0x50] sm:$0xff]   ;;  %v593_v34 = vld [vmem:[#allocation8 + $0x40] sm:$0xff]   ;;  %p666_p4 = por %p665_p3, %p664_p2 }
  0x31   :  { %192 = vmatprep.subr.bf16.mxu0 %v564_v7  ;;  %528 = vmatprep.subr.bf16.mxu1 %v583_v16  ;;  %v590_v31 = vld [vmem:[#allocation8 + $0x10] sm:$0xff]   ;;  %v594_v35 = vld [vmem:[#allocation8] sm:$0xff]  }
  0x32   :  { %v94_v40 = vld [vmem:[%s769_s2] sm:$0x3]  ;;  %p667_p5 = pnand %p666_p4, %p660_p1 }
  0x33   :  { %v103_v42 = vrot.slane %v94_v40, %v102_v38  ;;  %v99_v43 = vrot.slane %v94_v40, %v98_v39  ;;  %v521_v61 = vld [vmem:[%s771_s4] ss:$0 sm:$0xff] }
  0x34   :  { %193 = vmatpush1.bf16.msra.mxu0 %v566_v8  ;;  %529 = vmatpush3.bf16.msra.mxu1 %v584_v19  ;;  %v522_v19 = vld [vmem:[%s772_s5] ss:$0 sm:$0xff] }
  0x35   :  { %194 = vmatprep.subr.bf16.mxu0 %v567_v9  ;;  %530 = vmatprep.subr.bf16.mxu1 %v585_v20 }
  0x38   :  { %195 = vmatpush1.bf16.msra.mxu0 %v569_v11  ;;  %531 = vmatpush3.bf16.msra.mxu1 %v586_v22 }
  0x39   :  { %196 = vmatprep.subr.bf16.mxu0 %v570_v13  ;;  %532 = vmatprep.subr.bf16.mxu1 %v587_v24 }
  0x3c   :  { %197 = vmatpush1.bf16.msra.mxu0 %v572_v17  ;;  %533 = vmatpush3.bf16.msra.mxu1 %v588_v28 }
  0x3d   :  { %198 = vmatprep.subr.bf16.mxu0 %v573_v18  ;;  %534 = vmatprep.subr.bf16.mxu1 %v589_v30 }
  0x40   :  { %199 = vmatpush1.bf16.msra.mxu0 %v575_v21  ;;  %535 = vmatpush3.bf16.msra.mxu1 %v590_v31  ;;  %v523_v21 = vld [vmem:[%s773_s6] ss:$0 sm:$0xff] }
  0x41   :  { %200 = vmatprep.subr.bf16.mxu0 %v576_v23  ;;  %536 = vmatprep.subr.bf16.mxu1 %v591_v32 }
  0x44   :  { %201 = vmatpush1.bf16.msra.mxu0 %v578_v25  ;;  %537 = vmatpush3.bf16.msra.mxu1 %v592_v33 }
  0x45   :  { %538 = vmatprep.subr.bf16.mxu1 %v593_v34 }
  0x47   :  { %219 = vmatmul.mubr.bf16.vlgmr.msra.gmra.mxu0 %v77_v29 }
  0x48   :  { %539 = vmatpush3.bf16.msra.mxu1 %v594_v35 }
 0x107   :  { %v220_v41 = vpop.f32.mrf.mxu0 }
 0x108   :  { %v221_v48 = vadd.f32 %v220_v41, %v99_v43 }
 0x109   :  { %v222_v44 = vpop.f32.mrf.mxu0 }
 0x10a   :  { %v223_v46 = vadd.f32 %v222_v44, %v103_v42  ;;  %v229_v54 = vmax.f32 %v221_v48, 0.0 }
 0x10b   :  { %v224_v45 = vpop.f32.mrf.mxu0 }
 0x10c   :  { %v225_v47 = vadd.f32 %v224_v45, %v99_v43  ;;  %v230_v52 = vmax.f32 %v223_v46, 0.0 }
 0x10d   :  { %v226_v49 = vpop.f32.mrf.mxu0 }
 0x10e   :  { %v227_v50 = vadd.f32 %v226_v49, %v103_v42  ;;  %v231_v51 = vmax.f32 %v225_v47, 0.0 }
 0x110   :  { %v232_v53 = vmax.f32 %v227_v50, 0.0  ;;  %v235_v56 = vpack.c.bf16 %v231_v51, %v229_v54 }
 0x112   :  { %v236_v55 = vpack.c.bf16 %v232_v53, %v230_v52 }
 0x114   :  { %397 = vmatprep.mubr.bf16.mxu1 %v236_v55 }
 0x115   :  { %398 = vmatmul.mubr.bf16.vlgmr.msra.gmra.mxu1 %v235_v56 }
 0x1d5   :  { %v540_v57 = vpop.f32.mrf.mxu1 }
 0x1d7   :  { %v541_v58 = vpop.f32.mrf.mxu1 }
 0x1d8   :  { %v542_v59 = vadd.f32 %v541_v58, %v540_v57 }
 0x1d9   :  { %v543_v60 = vpop.f32.mrf.mxu1 }
 0x1da   :  { %v417_v62 = vadd.f32 %v542_v59, %v75_v26 }
 0x1db   :  { %v544_v63 = vpop.f32.mrf.mxu1 }
 0x1dc   :  { %v545_v0 = vadd.f32 %v544_v63, %v543_v60  ;;  %v426_v1 = vadd.f32 %v521_v61, %v417_v62 }
 0x1de   :  { %v418_v2 = vadd.f32 %v545_v0, %v76_v27  ;;  %428 = vadd.xlane.f32.xlu0 %v426_v1 }
 0x1e0   :  { %v427_v3 = vadd.f32 %v521_v61, %v418_v2 }
 0x1e2   :  { %430 = vadd.xlane.f32.xlu0 %v427_v3 }
 0x267   :  { %v429_v4 = vpop.xlane.xlu0 %428 }
 0x268   :  { %v433_v5 = vmul.f32 0.0078125, %v429_v4 }
 0x26a   :  { %v435_v6 = vsub.f32 %v426_v1, %v433_v5 }
 0x26b   :  { %v431_v7 = vpop.xlane.xlu0 %430 }
 0x26c   :  { %v434_v8 = vmul.f32 0.0078125, %v431_v7  ;;  %v437_v9 = vmul.f32 %v435_v6, %v435_v6 }
 0x26e   :  { %v436_v10 = vsub.f32 %v427_v3, %v434_v8  ;;  %439 = vadd.xlane.f32.xlu1 %v437_v9 }
 0x270   :  { %v438_v11 = vmul.f32 %v436_v10, %v436_v10 }
 0x272   :  { %441 = vadd.xlane.f32.xlu1 %v438_v11 }
 0x2f7   :  { %v440_v12 = vpop.xlane.xlu1 %439 }
 0x2f8   :  { %v443_v13 = vmul.f32 0.0078125, %v440_v12 }
 0x2fa   :  { %v445_v14 = vadd.f32 1e-05, %v443_v13 }
 0x2fb   :  { %v442_v15 = vpop.xlane.xlu1 %441 }
 0x2fc   :  { %595 = vrsqrt.f32 %v445_v14  ;;  %v444_v16 = vmul.f32 0.0078125, %v442_v15 }
 0x2fe   :  { %v446_v17 = vadd.f32 1e-05, %v444_v16 }
 0x300   :  { %597 = vrsqrt.f32 %v446_v17 }
 0x309   :  { %v596_v18 = vpop.eup %595 }
 0x30a   :  { %v449_v20 = vmul.f32 %v596_v18, %v435_v6 }
 0x30c   :  { %v458_v22 = vmul.f32 %v522_v19, %v449_v20 }
 0x30d   :  { %v598_v23 = vpop.eup %597 }
 0x30e   :  { %v450_v24 = vmul.f32 %v598_v23, %v436_v10  ;;  %v467_v25 = vadd.f32 %v523_v21, %v458_v22 }
 0x310   :  { %v459_v26 = vmul.f32 %v522_v19, %v450_v24  ;;  %469 = vst [vmem:[#allocation9] sm:$0xff] %v467_v25 }
 0x312   :  { %v468_v27 = vadd.f32 %v523_v21, %v459_v26 }
 0x314   :  { %470 = vst [vmem:[#allocation9 + $0x8] sm:$0xff] %v468_v27 }
 0x315   :  { %670 = shalt.err (!%p667_p5)
}
 0x316   :  { %482 = dma.vmem_to_hbm [thread:$0]  %s477_s24, 256, %s774_s7, [#allocation5], %s687_s29, %s687_s29, %s688_s30  }
 0x317   :  { %683 = dma.done.wait [#allocation5], 256  }
 0x318   :  { %684 = vsyncadd [#allocation5], 4294967040 }
 0x319   :  { %486 = vsyncpa [#allocation4], 1 }
 0x31a   :  { %487 = vsyncpa [#allocation7], 1 }
 0x31b   :  { %488 = vsyncpa [#allocation5], 1 }

</bundles_post_ra>
